<compile_context>
chip_gen: v5e
topology: v5e:2x2
jax: 0.10.0
libtpu: 0.0.40
codegen_flags: <defaults>
</compile_context>

<pallas_src>
import jax
import jax.numpy as jnp
from jax.experimental import pallas as pl
from jax.experimental.pallas import tpu as pltpu


# ------------------------------ kernel -----------------------------------
def _make_layernorm_kernel(eps: float, d: int):
    inv_d = 1.0 / float(d)
    inv_dm1 = 1.0 / float(d - 1)          # torch.std is the UNBIASED estimator

    def _layernorm_kernel(x_ref, g_ref, b_ref, o_ref):
        x = x_ref[...]                                   # (tile_m, D) f32
        mean = jnp.sum(x, axis=-1, keepdims=True) * inv_d
        xc = x - mean
        var = jnp.sum(xc * xc, axis=-1, keepdims=True) * inv_dm1
        std = jnp.sqrt(var)
        # The module divides by (std + eps), NOT sqrt(var + eps).
        # One reciprocal per row; broadcast multiply does the rest on the VPU.
        inv = 1.0 / (std + eps)                          # (tile_m, 1)
        o_ref[...] = g_ref[...] * (xc * inv) + b_ref[...]

    return _layernorm_kernel


def _choose_tile_m(m_pad: int) -> int:
    # Block bytes = tile_m * D * 4; with D=32, tile_m=8192 -> 1 MiB per buffer.
    # Double-buffered input + output => ~4 MiB, well inside the scoped VMEM
    # default on v5e/v6e/v7x, and large enough to amortize per-step overhead.
    for t in (8192, 4096, 2048, 1024, 512, 256, 128, 64, 32, 16, 8):
        if t <= m_pad and m_pad % t == 0:
            return t
    return m_pad  # degenerate tiny input: single full block


# ------------------------------ wrapper -----------------------------------
def pallas_layernorm(x, gamma, beta, eps=1e-6):
    """x: (..., D); gamma, beta: (D,) -> same shape/dtype as x."""
    orig_shape = x.shape
    orig_dtype = x.dtype
    d = orig_shape[-1]
    m = 1
    for s in orig_shape[:-1]:
        m *= s

    x2d = x.reshape(m, d).astype(jnp.float32)
    g2d = gamma.reshape(1, d).astype(jnp.float32)
    b2d = beta.reshape(1, d).astype(jnp.float32)

    # Pad rows to a multiple of 8 sublanes (padded rows normalize to `beta`
    # harmlessly and are sliced off afterwards).
    m_pad = ((m + 7) // 8) * 8
    if m_pad != m:
        x2d = jnp.pad(x2d, ((0, m_pad - m), (0, 0)))

    tile_m = _choose_tile_m(m_pad)
    grid = (m_pad // tile_m,)

    out = pl.pallas_call(
        _make_layernorm_kernel(float(eps), int(d)),
        out_shape=jax.ShapeDtypeStruct((m_pad, d), jnp.float32),
        grid=grid,
        in_specs=[
            pl.BlockSpec((tile_m, d), lambda i: (i, 0)),
            pl.BlockSpec((1, d), lambda i: (0, 0)),
            pl.BlockSpec((1, d), lambda i: (0, 0)),
        ],
        out_specs=pl.BlockSpec((tile_m, d), lambda i: (i, 0)),
        compiler_params=pltpu.CompilerParams(
            dimension_semantics=("parallel",)
        ),
    )(x2d, g2d, b2d)

    if m_pad != m:
        out = out[:m]
    return out.reshape(orig_shape).astype(orig_dtype)


# -------------------------- plain-JAX reference ----------------------------
def reference_layernorm(x, gamma, beta, eps=1e-6):
    mean = jnp.mean(x, axis=-1, keepdims=True)
    xc = x - mean
    var = jnp.sum(xc * xc, axis=-1, keepdims=True) / (x.shape[-1] - 1)
    std = jnp.sqrt(var)
    return gamma * (xc / (std + eps)) + beta


# --------------------------------- main ------------------------------------
if __name__ == "__main__":
    B, S, D = 2, 8, 32          # batch=2, seq=8, features (hidden)=32
    eps = 1e-6

    key0 = jax.random.PRNGKey(0)
    kx, kg, kb = jax.random.split(key0, 3)

    x = jax.random.normal(kx, (B, S, D), jnp.float32)
    # Module initializes a_2=ones, b_2=zeros; use non-trivial values here to
    # actually exercise the affine part of the forward pass.
    gamma = 1.0 + 0.1 * jax.random.normal(kg, (D,), jnp.float32)
    beta = 0.1 * jax.random.normal(kb, (D,), jnp.float32)

    out = pallas_layernorm(x, gamma, beta, eps=eps)
    out = jax.block_until_ready(out)

    ref = reference_layernorm(x, gamma, beta, eps=eps)
    assert out.shape == (B, S, D)
    assert jnp.allclose(out, ref, atol=1e-5, rtol=1e-5), (
        f"max abs diff {jnp.max(jnp.abs(out - ref))}"
    )

    print("KERNEL_OK")
</pallas_src>

<mosaic_0001>
module attributes {stable_mosaic.version = 11 : i64} {
  func.func @_layernorm_kernel(%arg0: i32, %arg1: memref<16x32xf32, #tpu.memory_space<vmem>>, %arg2: memref<1x32xf32, #tpu.memory_space<vmem>>, %arg3: memref<1x32xf32, #tpu.memory_space<vmem>>, %arg4: memref<16x32xf32, #tpu.memory_space<vmem>>) attributes {dimension_semantics = [#tpu.dimension_semantics<parallel>], iteration_bounds = array<i64: 1>, scalar_prefetch = 0 : i64, scratch_operands = 0 : i64, tpu.core_type = #tpu.core_type<tc>, window_params = [{transform_indices = @transform_0, window_bounds = array<i64: 16, 32>}, {pipeline_mode = #tpu.pipeline_mode<synchronous>, transform_indices = @transform_1, window_bounds = array<i64: 1, 32>}, {pipeline_mode = #tpu.pipeline_mode<synchronous>, transform_indices = @transform_2, window_bounds = array<i64: 1, 32>}, {transform_indices = @transform_3, window_bounds = array<i64: 16, 32>}]} {
    %c0 = arith.constant 0 : index
    %c0_0 = arith.constant 0 : index
    %0 = vector.load %arg1[%c0, %c0_0] : memref<16x32xf32, #tpu.memory_space<vmem>>, vector<16x32xf32>
    %cst = arith.constant dense<0.000000e+00> : vector<16xf32>
    %1 = vector.multi_reduction <add>, %0, %cst [1] : vector<16x32xf32> to vector<16xf32>
    %2 = vector.shape_cast %1 : vector<16xf32> to vector<16x1xf32>
    %cst_1 = arith.constant 3.125000e-02 : f32
    %3 = vector.broadcast %cst_1 : f32 to vector<16x1xf32>
    %4 = arith.mulf %2, %3 : vector<16x1xf32>
    %5 = vector.broadcast %4 : vector<16x1xf32> to vector<16x32xf32>
    %6 = arith.subf %0, %5 : vector<16x32xf32>
    %7 = arith.mulf %6, %6 : vector<16x32xf32>
    %cst_2 = arith.constant dense<0.000000e+00> : vector<16xf32>
    %8 = vector.multi_reduction <add>, %7, %cst_2 [1] : vector<16x32xf32> to vector<16xf32>
    %9 = vector.shape_cast %8 : vector<16xf32> to vector<16x1xf32>
    %cst_3 = arith.constant 0.0322580636 : f32
    %10 = vector.broadcast %cst_3 : f32 to vector<16x1xf32>
    %11 = arith.mulf %9, %10 : vector<16x1xf32>
    %12 = math.sqrt %11 : vector<16x1xf32>
    %cst_4 = arith.constant 9.99999997E-7 : f32
    %13 = vector.broadcast %cst_4 : f32 to vector<16x1xf32>
    %14 = arith.addf %12, %13 : vector<16x1xf32>
    %cst_5 = arith.constant 1.000000e+00 : f32
    %15 = vector.broadcast %cst_5 : f32 to vector<16x1xf32>
    %16 = arith.divf %15, %14 : vector<16x1xf32>
    %c0_6 = arith.constant 0 : index
    %c0_7 = arith.constant 0 : index
    %17 = vector.load %arg2[%c0_6, %c0_7] : memref<1x32xf32, #tpu.memory_space<vmem>>, vector<1x32xf32>
    %18 = vector.broadcast %16 : vector<16x1xf32> to vector<16x32xf32>
    %19 = arith.mulf %6, %18 : vector<16x32xf32>
    %20 = vector.broadcast %17 : vector<1x32xf32> to vector<16x32xf32>
    %21 = arith.mulf %20, %19 : vector<16x32xf32>
    %c0_8 = arith.constant 0 : index
    %c0_9 = arith.constant 0 : index
    %22 = vector.load %arg3[%c0_8, %c0_9] : memref<1x32xf32, #tpu.memory_space<vmem>>, vector<1x32xf32>
    %23 = vector.broadcast %22 : vector<1x32xf32> to vector<16x32xf32>
    %24 = arith.addf %21, %23 : vector<16x32xf32>
    %c0_10 = arith.constant 0 : index
    %c0_11 = arith.constant 0 : index
    %25 = vector.load %arg4[%c0_10, %c0_11] : memref<16x32xf32, #tpu.memory_space<vmem>>, vector<16x32xf32>
    tpu.vector_store %arg4[%c0_10, %c0_11], %24 {strides = array<i32>} : memref<16x32xf32, #tpu.memory_space<vmem>>, vector<16x32xf32>,
    return
  }
  func.func @transform_0(%arg0: i32) -> (i32, i32) {
    %c0_i32 = arith.constant 0 : i32
    %c0_i32_0 = arith.constant 0 : i32
    return %arg0, %c0_i32 : i32, i32
  }
  func.func @transform_1(%arg0: i32) -> (i32, i32) {
    %c0_i32 = arith.constant 0 : i32
    %c0_i32_0 = arith.constant 0 : i32
    %c0_i32_1 = arith.constant 0 : i32
    return %c0_i32, %c0_i32_0 : i32, i32
  }
  func.func @transform_2(%arg0: i32) -> (i32, i32) {
    %c0_i32 = arith.constant 0 : i32
    %c0_i32_0 = arith.constant 0 : i32
    %c0_i32_1 = arith.constant 0 : i32
    return %c0_i32, %c0_i32_0 : i32, i32
  }
  func.func @transform_3(%arg0: i32) -> (i32, i32) {
    %c0_i32 = arith.constant 0 : i32
    %c0_i32_0 = arith.constant 0 : i32
    return %arg0, %c0_i32 : i32, i32
  }
}

</mosaic_0001>

<bundles_post_ra>
// kernel: tpu_custom_call.1
= control target key start
LH: loop header
LB: loop body
LE: loop exit
PB: predicated region body
PF: predicated region fallthrough
CT: control target
= control target key end

     0   :  { %8 = vsyncpa [#allocation3], 0  ;;  %s307_s0 = inlined_call_operand.hbm [shape: f32[16,32], index: 0, kind: input, shape index: {}]   ;;  %s308_s1 = inlined_call_operand.hbm [shape: f32[1,32], index: 1, kind: input, shape index: {}]   ;;  %s309_s2 = inlined_call_operand.vmem [shape: f32[1,32], index: 2, kind: input, shape index: {}]   ;;  %s310_s3 = inlined_call_operand.hbm [shape: f32[16,32], index: 3, kind: output, shape index: {}]  }
   0x1   :  { %9 = vsyncpa [#allocation6], 0 }
   0x2   :  { %10 = vsyncpa [#allocation4], 0  ;;  %s15_s14 = sshll.u32 %s307_s0, 4  ;;  %s253_s15 = smov [#allocation2]   ;;  %s16_s14 = int_to_ptr.hbm [resolvable:$true] %s15_s14 }
   0x3   :  { %s17_s16 = sshll.u32 %s253_s15, 4  ;;  %s29_s19 = sshll.u32 %s308_s1, 4  ;;  %s18_s16 = int_to_ptr.vmem [resolvable:$true] %s17_s16  ;;  %s30_s19 = int_to_ptr.hbm [resolvable:$true] %s29_s19 }
   0x4   :  { %s254_s20 = smov 128   ;;  %s255_s21 = smov 8  }
   0x5   :  { %23 = dma.hbm_to_vmem [thread:$0]  %s16_s14, 256, %s18_s16, [#allocation3], %s254_s20, %s254_s20, %s255_s21  }
   0x6   :  { %s256_s22 = smov [#allocation5]  }
   0x7   :  { %s31_s23 = sshll.u32 %s256_s22, 4  ;;  %s32_s23 = int_to_ptr.vmem [resolvable:$true] %s31_s23 }
   0x8   :  { %34 = dma.hbm_to_vmem [thread:$0]  %s30_s19, 16, %s32_s23, [#allocation6]  }
   0x9   :  { %247 = dma.done.wait [#allocation3], 256  }
   0xa   :  { %248 = vsyncadd [#allocation3], 4294967040 }
   0xb   :  { %249 = dma.done.wait [#allocation6], 16  }
   0xc   :  { %250 = vsyncadd [#allocation6], 4294967280  ;;  %vm47_vm0 = vcmask 261120   ;;  %v45_v0 = vld [vmem:[#allocation2] sm:$0xff]  ;;  %v46_v2 = vld [vmem:[#allocation2 + $0x8] sm:$0xff]  ;;  %s257_s24 = smov [#allocation7]  }
   0xd   :  { %v48_v1 = vsel %vm47_vm0, %v45_v0, 0.0  ;;  %v51_v3 = vsel %vm47_vm0, %v46_v2, 0.0  ;;  %v165_v51 = vld [vmem:[#allocation5] ss:$0 sm:$0xff]  ;;  %v166_v55 = vld [vmem:[%s309_s2] ss:$0 sm:$0xff] }
   0xe   :  { %49 = vadd.xlane.f32.xlu0 %v48_v1  ;;  %s144_s25 = sshll.u32 %s257_s24, 4  ;;  %s146_s27 = sshll.u32 %s310_s3, 4  ;;  %s145_s25 = int_to_ptr.vmem [resolvable:$true] %s144_s25  ;;  %s147_s27 = int_to_ptr.hbm [resolvable:$true] %s146_s27 }
  0x16   :  { %52 = vadd.xlane.f32.xlu0 %v51_v3 }
  0x81   :  { %v50_v4 = vpop.xlane.xlu0 %49 }
  0x82   :  { %v54_v5 = vmul.f32 0.03125, %v50_v4 }
  0x84   :  { %v56_v6 = vsub.f32 %v45_v0, %v54_v5 }
  0x86   :  { %v58_v7 = vmul.f32 %v56_v6, %v56_v6 }
  0x88   :  { %v60_v8 = vsel %vm47_vm0, %v58_v7, 0.0 }
  0x89   :  { %61 = vadd.xlane.f32.xlu1 %v60_v8  ;;  %v53_v9 = vpop.xlane.xlu0 %52 }
  0x8a   :  { %v55_v10 = vmul.f32 0.03125, %v53_v9 }
  0x8c   :  { %v290_v11 = vsub.f32 %v46_v2, %v55_v10 }
  0x8e   :  { %v59_v12 = vmul.f32 %v290_v11, %v290_v11 }
  0x90   :  { %v63_v13 = vsel %vm47_vm0, %v59_v12, 0.0 }
  0x91   :  { %64 = vadd.xlane.f32.xlu1 %v63_v13 }
  0xfc   :  { %v62_v14 = vpop.xlane.xlu1 %61 }
  0xfd   :  { %v66_v15 = vmul.f32 0.032258064, %v62_v14 }
  0xff   :  { %167 = vrsqrt.f32 %v66_v15  ;;  %vm75_vm1 = vcmp.eq.f32.partialorder %v66_v15, inf  ;;  %v78_v28 = vand.u32 2147483648, %v66_v15  ;;  %vm77_vm2 = vcmp.eq.f32.partialorder %v66_v15, 0.0 }
 0x104   :  { %v65_v16 = vpop.xlane.xlu1 %64 }
 0x105   :  { %v168_v17 = vpop.eup %167  ;;  %v67_v18 = vmul.f32 0.032258064, %v65_v16 }
 0x106   :  { %v69_v19 = vmul.f32 %v168_v17, %v66_v15 }
 0x107   :  { %169 = vrsqrt.f32 %v67_v18  ;;  %vm87_vm3 = vcmp.eq.f32.partialorder %v67_v18, inf  ;;  %v90_v36 = vand.u32 2147483648, %v67_v18  ;;  %vm89_vm4 = vcmp.eq.f32.partialorder %v67_v18, 0.0 }
 0x108   :  { %v70_v20 = vmul.f32 %v168_v17, %v69_v19 }
 0x10a   :  { %v71_v21 = vmul.f32 0.5, %v70_v20 }
 0x10c   :  { %v72_v22 = vsub.f32 1.5, %v71_v21 }
 0x10d   :  { %v170_v23 = vpop.eup %169 }
 0x10e   :  { %v73_v24 = vmul.f32 %v168_v17, %v72_v22  ;;  %v81_v25 = vmul.f32 %v170_v23, %v67_v18 }
 0x110   :  { %v74_v26 = vmul.f32 %v73_v24, %v66_v15  ;;  %v82_v27 = vmul.f32 %v170_v23, %v81_v25 }
 0x112   :  { %v76_v29 = vsel %vm75_vm1, %v66_v15, %v74_v26  ;;  %v83_v30 = vmul.f32 0.5, %v82_v27 }
 0x113   :  { %v79_v31 = vsel %vm77_vm2, %v78_v28, %v76_v29 }
 0x114   :  { %v92_v32 = vadd.f32 1e-06, %v79_v31  ;;  %v84_v33 = vsub.f32 1.5, %v83_v30 }
 0x116   :  { %171 = vrcp.f32 %v92_v32  ;;  %v85_v34 = vmul.f32 %v170_v23, %v84_v33  ;;  %v105_v43 = vand.u32 2147483648, %v92_v32  ;;  %v103_v45 = vand.u32 2147483647, %v92_v32 }
 0x117   :  { %vm99_vm6 = vweird.f32 %v92_v32 }
 0x118   :  { %v86_v35 = vmul.f32 %v85_v34, %v67_v18  ;;  %v106_v48 = vor.u32 1.1754944e-38, %v105_v43  ;;  %vm104_vm8 = vcmp.eq.f32.partialorder %v103_v45, 8.507059e+37 }
 0x11a   :  { %v88_v37 = vsel %vm87_vm3, %v67_v18, %v86_v35 }
 0x11b   :  { %v91_v38 = vsel %vm89_vm4, %v90_v36, %v88_v37 }
 0x11c   :  { %v172_v39 = vpop.eup %171  ;;  %v93_v40 = vadd.f32 1e-06, %v91_v38 }
 0x11d   :  { %v95_v41 = vmul.f32 %v172_v39, %v92_v32  ;;  %vm100_vm5 = vweird.f32 %v172_v39 }
 0x11e   :  { %173 = vrcp.f32 %v93_v40  ;;  %vm101_vm7 = vmor %vm99_vm6, %vm100_vm5  ;;  %v120_v56 = vand.u32 2147483648, %v93_v40  ;;  %v118_v58 = vand.u32 2147483647, %v93_v40  ;;  %vm114_vm10 = vweird.f32 %v93_v40 }
 0x11f   :  { %v96_v42 = vsub.f32 1.0, %v95_v41 }
 0x120   :  { %v121_v62 = vor.u32 1.1754944e-38, %v120_v56  ;;  %vm119_vm12 = vcmp.eq.f32.partialorder %v118_v58, 8.507059e+37 }
 0x121   :  { %v97_v44 = vmul.f32 %v172_v39, %v96_v42 }
 0x123   :  { %v98_v46 = vadd.f32 %v172_v39, %v97_v44 }
 0x124   :  { %v174_v47 = vpop.eup %173 }
 0x125   :  { %v102_v49 = vsel %vm101_vm7, %v172_v39, %v98_v46  ;;  %v110_v50 = vmul.f32 %v174_v47, %v93_v40  ;;  %vm115_vm9 = vweird.f32 %v174_v47 }
 0x126   :  { %v107_v52 = vsel %vm104_vm8, %v106_v48, %v102_v49  ;;  %vm116_vm11 = vmor %vm114_vm10, %vm115_vm9 }
 0x127   :  { %v111_v53 = vsub.f32 1.0, %v110_v50  ;;  %v125_v54 = vmul.f32 %v107_v52, %v56_v6 }
 0x129   :  { %v112_v57 = vmul.f32 %v174_v47, %v111_v53  ;;  %v130_v59 = vmul.f32 %v165_v51, %v125_v54 }
 0x12b   :  { %v113_v60 = vadd.f32 %v174_v47, %v112_v57  ;;  %v136_v61 = vadd.f32 %v166_v55, %v130_v59 }
 0x12d   :  { %v117_v63 = vsel %vm116_vm11, %v174_v47, %v113_v60  ;;  %138 = vst.msk [vmem:[#allocation7] sm:$0xff] %vm47_vm0, %v136_v61 }
 0x12e   :  { %v122_v0 = vsel %vm119_vm12, %v121_v62, %v117_v63 }
 0x12f   :  { %v126_v1 = vmul.f32 %v122_v0, %v290_v11 }
 0x131   :  { %v131_v2 = vmul.f32 %v165_v51, %v126_v1 }
 0x133   :  { %v137_v3 = vadd.f32 %v166_v55, %v131_v2 }
 0x135   :  { %139 = vst.msk [vmem:[#allocation7 + $0x8] sm:$0xff] %vm47_vm0, %v137_v3 }
 0x136   :  { %152 = dma.vmem_to_hbm [thread:$0]  %s145_s25, 256, %s147_s27, [#allocation4], %s254_s20, %s254_s20, %s255_s21  }
 0x137   :  { %251 = dma.done.wait [#allocation4], 256  }
 0x138   :  { %252 = vsyncadd [#allocation4], 4294967040 }
 0x139   :  { %157 = vsyncpa [#allocation3], 1 }
 0x13a   :  { %158 = vsyncpa [#allocation6], 1 }
 0x13b   :  { %159 = vsyncpa [#allocation4], 1 }

</bundles_post_ra>
